<compile_context>
chip_gen: v7x
topology: tpu7x:2x2x1
jax: 0.10.0
libtpu: 0.0.40
codegen_flags: <defaults>
</compile_context>

<pallas_src>
import math

import jax
import jax.numpy as jnp
from jax.experimental import pallas as pl
from jax.experimental.pallas import tpu as pltpu

# ----------------------------- config (small) -------------------------------
B = 2            # batch
S = 8            # sequence length
H = 32           # hidden size
NH = 4           # num attention heads
DH = H // NH     # attention head size
I = 64           # intermediate (MLP) size
EPS = 1e-12      # LayerNorm variance epsilon
NEG_INF = -1e30  # additive mask bias (exp underflows to exactly 0)
VW = 3 * H       # packed parameter-vector row width


# ------------------------------ in-kernel math ------------------------------
def _gelu(x):
    # tanh-approximation GELU (EUP tanh); matches erf-GELU to ~1e-3, well inside tol.
    c = math.sqrt(2.0 / math.pi)
    return 0.5 * x * (1.0 + jnp.tanh(c * (x + 0.044715 * x * x * x)))


def _layernorm(h, gamma, beta):
    mean = jnp.mean(h, axis=-1, keepdims=True)
    c = h - mean
    var = jnp.mean(c * c, axis=-1, keepdims=True)
    return gamma * (c * jax.lax.rsqrt(var + EPS)) + beta


# --------------------------------- kernel -----------------------------------
def bert_layer_kernel(x_ref,      # (B*S, H) f32
                      maskb_ref,  # (NH*B, 1, S) f32 additive bias (0 or NEG_INF)
                      wqkv_ref,   # (H, 3H) bf16  (Q columns pre-scaled by 1/sqrt(DH))
                      wo_ref,     # (H, H) bf16
                      w1_ref,     # (H, I) bf16
                      w2_ref,     # (I, H) bf16
                      vecs_ref,   # (8, 3H) f32 packed bias/LN vectors
                      out_ref):   # (B*S, H) f32
    xf = x_ref[...]                                     # (B*S, H)

    vecs = vecs_ref[...]                                # single load, static row slices
    bqkv = vecs[0:1, :]                                 # (1, 3H)  (Q part pre-scaled)
    bo = vecs[1:2, :H]
    g1 = vecs[2:3, :H]
    be1 = vecs[3:4, :H]
    b1 = vecs[4:5, :I]
    b2 = vecs[5:6, :H]
    g2 = vecs[6:7, :H]
    be2 = vecs[7:8, :H]

    # Fused Q/K/V projection: one bf16 MXU matmul, f32 accumulation.
    qkv = jnp.dot(xf.astype(jnp.bfloat16), wqkv_ref[...],
                  preferred_element_type=jnp.float32) + bqkv        # (B*S, 3H)

    # Fold heads into the batch dim: (B*S, H)-columns -> (NH*B, S, DH).
    # Only lane slices, leading-dim stacks and sublane-tile-boundary reshapes.
    def to_heads(off):
        pieces = [qkv[:, off + h * DH: off + (h + 1) * DH] for h in range(NH)]
        t = jnp.stack(pieces, axis=0)                   # (NH, B*S, DH)
        t = t.reshape(NH, B, S, DH).reshape(NH * B, S, DH)
        return t.astype(jnp.bfloat16)

    q = to_heads(0)
    k = to_heads(H)
    v = to_heads(2 * H)

    # One batched score einsum for all (head, batch) pairs (scale folded into Wq).
    s = jnp.einsum('bqd,bkd->bqk', q, k,
                   preferred_element_type=jnp.float32)              # (NH*B, S, S)
    s = s + maskb_ref[...]                                          # single masked add
    # TODO(synk): fully-masked rows give a uniform softmax here (vs -inf/NaN in torch).
    m = jnp.max(s, axis=-1, keepdims=True)
    e = jnp.exp(s - m)
    inv = pl.reciprocal(jnp.sum(e, axis=-1, keepdims=True), approx=True)
    probs = (e * inv).astype(jnp.bfloat16)
    ctx = jnp.einsum('bqk,bkd->bqd', probs, v,
                     preferred_element_type=jnp.float32)            # (NH*B, S, DH)

    # merge_heads: (NH*B, S, DH) -> (B*S, H)
    ctx = ctx.reshape(NH, B, S, DH).reshape(NH, B * S, DH)
    ctx = jnp.concatenate([ctx[h] for h in range(NH)], axis=-1)     # (B*S, H)

    # Attention output projection + residual + LayerNorm 1.
    attn = jnp.dot(ctx.astype(jnp.bfloat16), wo_ref[...],
                   preferred_element_type=jnp.float32) + bo
    h1 = _layernorm(attn + xf, g1, be1)

    # MLP (expand -> gelu -> contract) + residual + LayerNorm 2.
    a = jnp.dot(h1.astype(jnp.bfloat16), w1_ref[...],
                preferred_element_type=jnp.float32) + b1
    g = _gelu(a)
    m2 = jnp.dot(g.astype(jnp.bfloat16), w2_ref[...],
                 preferred_element_type=jnp.float32) + b2
    out_ref[...] = _layernorm(m2 + h1, g2, be2)                     # single writeback


# --------------------------------- wrapper ----------------------------------
def _bert_layer_impl(x, attention_mask, params):
    """x: (B, S, H) f32, attention_mask: (B, S) int (1 = attend, 0 = masked)."""
    scale = 1.0 / math.sqrt(DH)

    # Fuse Q/K/V weights (fold softmax scale into Q), cast matmul weights to bf16.
    wqkv = jnp.concatenate([params["wq"] * scale, params["wk"], params["wv"]],
                           axis=1).astype(jnp.bfloat16)             # (H, 3H)
    wo = params["wo"].astype(jnp.bfloat16)
    w1 = params["w1"].astype(jnp.bfloat16)
    w2 = params["w2"].astype(jnp.bfloat16)

    # Pack the 8 tiny (1, N) vectors into one zero-padded (8, 3H) f32 array.
    def pad_row(v):
        return jnp.pad(v, ((0, 0), (0, VW - v.shape[1])))
    vecs = jnp.concatenate([
        pad_row(jnp.concatenate([params["bq"] * scale, params["bk"], params["bv"]],
                                axis=1)),                            # bqkv (3H)
        pad_row(params["bo"]), pad_row(params["g1"]), pad_row(params["be1"]),
        pad_row(params["b1"]), pad_row(params["b2"]),
        pad_row(params["g2"]), pad_row(params["be2"]),
    ], axis=0)                                                       # (8, 3H) f32

    # Additive attention bias, replicated per head (head-major to match the kernel).
    maskb = ((1.0 - attention_mask.astype(jnp.float32)) * NEG_INF).reshape(B, 1, S)
    mask_all = jnp.broadcast_to(maskb[None], (NH, B, 1, S)).reshape(NH * B, 1, S)

    x2d = x.reshape(B * S, H)

    vmem = pl.BlockSpec(memory_space=pltpu.MemorySpace.VMEM)   # whole array resident
    out2d = pl.pallas_call(
        bert_layer_kernel,
        out_shape=jax.ShapeDtypeStruct((B * S, H), jnp.float32),
        in_specs=[vmem] * 7,
        out_specs=vmem,
    )(x2d, mask_all, wqkv, wo, w1, w2, vecs)
    return out2d.reshape(B, S, H)


bert_layer = jax.jit(_bert_layer_impl)


# ------------------------- pure-JAX reference (check) ------------------------
def ref_layer(x, mask, p):
    def ln(h, g, b):
        mean = h.mean(-1, keepdims=True)
        var = ((h - mean) ** 2).mean(-1, keepdims=True)
        return g * (h - mean) / jnp.sqrt(var + EPS) + b

    with jax.default_matmul_precision("highest"):
        q = x @ p["wq"] + p["bq"][0]
        k = x @ p["wk"] + p["bk"][0]
        v = x @ p["wv"] + p["bv"][0]
        split = lambda t: t.reshape(B, S, NH, DH).transpose(0, 2, 1, 3)
        q, k, v = split(q), split(k), split(v)
        scores = (q @ k.transpose(0, 1, 3, 2)) / math.sqrt(DH)
        scores = jnp.where(mask[:, None, None, :] == 1, scores, -jnp.inf)
        w = jax.nn.softmax(scores, axis=-1)
        ctx = (w @ v).transpose(0, 2, 1, 3).reshape(B, S, H)
        attn = ctx @ p["wo"] + p["bo"][0]
        h1 = ln(attn + x, p["g1"][0], p["be1"][0])
        a = h1 @ p["w1"] + p["b1"][0]
        g = a * 0.5 * (1.0 + jax.scipy.special.erf(a / math.sqrt(2.0)))
        m = g @ p["w2"] + p["b2"][0]
        return ln(m + h1, p["g2"][0], p["be2"][0])


# ----------------------------------- main ------------------------------------
if __name__ == "__main__":
    key = jax.random.PRNGKey(0)
    ks = jax.random.split(key, 10)

    def w(k, shape):
        return (0.02 * jax.random.normal(k, shape)).astype(jnp.float32)

    params = {
        "wq": w(ks[0], (H, H)), "bq": jnp.zeros((1, H), jnp.float32),
        "wk": w(ks[1], (H, H)), "bk": jnp.zeros((1, H), jnp.float32),
        "wv": w(ks[2], (H, H)), "bv": jnp.zeros((1, H), jnp.float32),
        "wo": w(ks[3], (H, H)), "bo": jnp.zeros((1, H), jnp.float32),
        "g1": jnp.ones((1, H), jnp.float32), "be1": jnp.zeros((1, H), jnp.float32),
        "w1": w(ks[4], (H, I)), "b1": jnp.zeros((1, I), jnp.float32),
        "w2": w(ks[5], (I, H)), "b2": jnp.zeros((1, H), jnp.float32),
        "g2": jnp.ones((1, H), jnp.float32), "be2": jnp.zeros((1, H), jnp.float32),
    }

    x = jax.random.normal(ks[6], (B, S, H), dtype=jnp.float32)
    mask = jnp.ones((B, S), dtype=jnp.int32)
    mask = mask.at[0, -2:].set(0)   # mask out a couple of keys in batch 0

    out = bert_layer(x, mask, params)
    out = jax.block_until_ready(out)

    ref = ref_layer(x, mask, params)
    assert out.shape == (B, S, H), out.shape
    assert bool(jnp.all(jnp.isfinite(out)))
    # Kernel uses single-pass bf16 MXU matmuls (f32 accumulation), tanh-GELU and an
    # approx softmax reciprocal; compare against an f32-'highest' erf reference with
    # a tolerance that covers those approximations.
    max_err = float(jnp.max(jnp.abs(out - ref)))
    assert bool(jnp.allclose(out, ref, atol=1e-2, rtol=1e-2)), max_err

    print("KERNEL_OK")
</pallas_src>

<mosaic_0001>
module attributes {stable_mosaic.version = 11 : i64} {
  func.func @bert_layer_kernel(%arg0: memref<16x32xf32, #tpu.memory_space<vmem>>, %arg1: memref<8x1x8xf32, #tpu.memory_space<vmem>>, %arg2: memref<32x96xbf16, #tpu.memory_space<vmem>>, %arg3: memref<32x32xbf16, #tpu.memory_space<vmem>>, %arg4: memref<32x64xbf16, #tpu.memory_space<vmem>>, %arg5: memref<64x32xbf16, #tpu.memory_space<vmem>>, %arg6: memref<8x96xf32, #tpu.memory_space<vmem>>, %arg7: memref<16x32xf32, #tpu.memory_space<vmem>>) attributes {dimension_semantics = [], scalar_prefetch = 0 : i64, scratch_operands = 0 : i64, tpu.core_type = #tpu.core_type<tc>} {
    %c0 = arith.constant 0 : index
    %c0_0 = arith.constant 0 : index
    %0 = vector.load %arg0[%c0, %c0_0] : memref<16x32xf32, #tpu.memory_space<vmem>>, vector<16x32xf32>
    %c0_1 = arith.constant 0 : index
    %c0_2 = arith.constant 0 : index
    %1 = vector.load %arg6[%c0_1, %c0_2] : memref<8x96xf32, #tpu.memory_space<vmem>>, vector<8x96xf32>
    %2 = vector.extract_strided_slice %1 {offsets = [0, 0], sizes = [1, 96], strides = [1, 1]} : vector<8x96xf32> to vector<1x96xf32>
    %3 = vector.extract_strided_slice %1 {offsets = [1, 0], sizes = [1, 32], strides = [1, 1]} : vector<8x96xf32> to vector<1x32xf32>
    %4 = vector.extract_strided_slice %1 {offsets = [2, 0], sizes = [1, 32], strides = [1, 1]} : vector<8x96xf32> to vector<1x32xf32>
    %5 = vector.extract_strided_slice %1 {offsets = [3, 0], sizes = [1, 32], strides = [1, 1]} : vector<8x96xf32> to vector<1x32xf32>
    %6 = vector.extract_strided_slice %1 {offsets = [4, 0], sizes = [1, 64], strides = [1, 1]} : vector<8x96xf32> to vector<1x64xf32>
    %7 = vector.extract_strided_slice %1 {offsets = [5, 0], sizes = [1, 32], strides = [1, 1]} : vector<8x96xf32> to vector<1x32xf32>
    %8 = vector.extract_strided_slice %1 {offsets = [6, 0], sizes = [1, 32], strides = [1, 1]} : vector<8x96xf32> to vector<1x32xf32>
    %9 = vector.extract_strided_slice %1 {offsets = [7, 0], sizes = [1, 32], strides = [1, 1]} : vector<8x96xf32> to vector<1x32xf32>
    %10 = arith.truncf %0 : vector<16x32xf32> to vector<16x32xbf16>
    %c0_3 = arith.constant 0 : index
    %c0_4 = arith.constant 0 : index
    %11 = vector.load %arg2[%c0_3, %c0_4] : memref<32x96xbf16, #tpu.memory_space<vmem>>, vector<32x96xbf16>
    %cst = arith.constant dense<0.000000e+00> : vector<16x96xf32>
    %12 = tpu.matmul %10, %11, %cst {dimension_numbers = #tpu.dot_dimension_numbers<[1], [0], [0], [1], [0, 0, 1, 1], [], []>} : vector<16x32xbf16>, vector<32x96xbf16>, vector<16x96xf32> -> vector<16x96xf32>
    %13 = vector.broadcast %2 : vector<1x96xf32> to vector<16x96xf32>
    %14 = arith.addf %12, %13 : vector<16x96xf32>
    %15 = vector.extract_strided_slice %14 {offsets = [0, 0], sizes = [16, 8], strides = [1, 1]} : vector<16x96xf32> to vector<16x8xf32>
    %16 = vector.extract_strided_slice %14 {offsets = [0, 8], sizes = [16, 8], strides = [1, 1]} : vector<16x96xf32> to vector<16x8xf32>
    %17 = vector.extract_strided_slice %14 {offsets = [0, 16], sizes = [16, 8], strides = [1, 1]} : vector<16x96xf32> to vector<16x8xf32>
    %18 = vector.extract_strided_slice %14 {offsets = [0, 24], sizes = [16, 8], strides = [1, 1]} : vector<16x96xf32> to vector<16x8xf32>
    %19 = vector.shape_cast %15 : vector<16x8xf32> to vector<1x16x8xf32>
    %20 = vector.shape_cast %16 : vector<16x8xf32> to vector<1x16x8xf32>
    %21 = vector.shape_cast %17 : vector<16x8xf32> to vector<1x16x8xf32>
    %22 = vector.shape_cast %18 : vector<16x8xf32> to vector<1x16x8xf32>
    %23 = tpu.concatenate %19, %20, %21, %22 in 0 : vector<1x16x8xf32>, vector<1x16x8xf32>, vector<1x16x8xf32>, vector<1x16x8xf32> -> vector<4x16x8xf32>
    %24 = vector.shape_cast %23 : vector<4x16x8xf32> to vector<4x2x8x8xf32>
    %25 = vector.shape_cast %24 : vector<4x2x8x8xf32> to vector<8x8x8xf32>
    %26 = arith.truncf %25 : vector<8x8x8xf32> to vector<8x8x8xbf16>
    %27 = vector.extract_strided_slice %14 {offsets = [0, 32], sizes = [16, 8], strides = [1, 1]} : vector<16x96xf32> to vector<16x8xf32>
    %28 = vector.extract_strided_slice %14 {offsets = [0, 40], sizes = [16, 8], strides = [1, 1]} : vector<16x96xf32> to vector<16x8xf32>
    %29 = vector.extract_strided_slice %14 {offsets = [0, 48], sizes = [16, 8], strides = [1, 1]} : vector<16x96xf32> to vector<16x8xf32>
    %30 = vector.extract_strided_slice %14 {offsets = [0, 56], sizes = [16, 8], strides = [1, 1]} : vector<16x96xf32> to vector<16x8xf32>
    %31 = vector.shape_cast %27 : vector<16x8xf32> to vector<1x16x8xf32>
    %32 = vector.shape_cast %28 : vector<16x8xf32> to vector<1x16x8xf32>
    %33 = vector.shape_cast %29 : vector<16x8xf32> to vector<1x16x8xf32>
    %34 = vector.shape_cast %30 : vector<16x8xf32> to vector<1x16x8xf32>
    %35 = tpu.concatenate %31, %32, %33, %34 in 0 : vector<1x16x8xf32>, vector<1x16x8xf32>, vector<1x16x8xf32>, vector<1x16x8xf32> -> vector<4x16x8xf32>
    %36 = vector.shape_cast %35 : vector<4x16x8xf32> to vector<4x2x8x8xf32>
    %37 = vector.shape_cast %36 : vector<4x2x8x8xf32> to vector<8x8x8xf32>
    %38 = arith.truncf %37 : vector<8x8x8xf32> to vector<8x8x8xbf16>
    %39 = vector.extract_strided_slice %14 {offsets = [0, 64], sizes = [16, 8], strides = [1, 1]} : vector<16x96xf32> to vector<16x8xf32>
    %40 = vector.extract_strided_slice %14 {offsets = [0, 72], sizes = [16, 8], strides = [1, 1]} : vector<16x96xf32> to vector<16x8xf32>
    %41 = vector.extract_strided_slice %14 {offsets = [0, 80], sizes = [16, 8], strides = [1, 1]} : vector<16x96xf32> to vector<16x8xf32>
    %42 = vector.extract_strided_slice %14 {offsets = [0, 88], sizes = [16, 8], strides = [1, 1]} : vector<16x96xf32> to vector<16x8xf32>
    %43 = vector.shape_cast %39 : vector<16x8xf32> to vector<1x16x8xf32>
    %44 = vector.shape_cast %40 : vector<16x8xf32> to vector<1x16x8xf32>
    %45 = vector.shape_cast %41 : vector<16x8xf32> to vector<1x16x8xf32>
    %46 = vector.shape_cast %42 : vector<16x8xf32> to vector<1x16x8xf32>
    %47 = tpu.concatenate %43, %44, %45, %46 in 0 : vector<1x16x8xf32>, vector<1x16x8xf32>, vector<1x16x8xf32>, vector<1x16x8xf32> -> vector<4x16x8xf32>
    %48 = vector.shape_cast %47 : vector<4x16x8xf32> to vector<4x2x8x8xf32>
    %49 = vector.shape_cast %48 : vector<4x2x8x8xf32> to vector<8x8x8xf32>
    %50 = arith.truncf %49 : vector<8x8x8xf32> to vector<8x8x8xbf16>
    "tpu.trace_start"() <{level = 10 : i32, message = "bqd,bkd->bqk"}> : () -> ()
    %cst_5 = arith.constant dense<0.000000e+00> : vector<8x8x8xf32>
    %51 = tpu.matmul %26, %38, %cst_5 {dimension_numbers = #tpu.dot_dimension_numbers<[2], [2], [1], [1], [0, 0, 0, 1, 1, 1], [0], [0]>} : vector<8x8x8xbf16>, vector<8x8x8xbf16>, vector<8x8x8xf32> -> vector<8x8x8xf32>
    "tpu.trace_stop"() : () -> ()
    %c0_6 = arith.constant 0 : index
    %c0_7 = arith.constant 0 : index
    %c0_8 = arith.constant 0 : index
    %52 = vector.load %arg1[%c0_6, %c0_7, %c0_8] : memref<8x1x8xf32, #tpu.memory_space<vmem>>, vector<8x1x8xf32>
    %53 = vector.broadcast %52 : vector<8x1x8xf32> to vector<8x8x8xf32>
    %54 = arith.addf %51, %53 : vector<8x8x8xf32>
    %cst_9 = arith.constant dense<0xFF800000> : vector<8x8xf32>
    %55 = vector.multi_reduction <maximumf>, %54, %cst_9 [2] : vector<8x8x8xf32> to vector<8x8xf32>
    %56 = vector.shape_cast %55 : vector<8x8xf32> to vector<8x8x1xf32>
    %57 = vector.broadcast %56 : vector<8x8x1xf32> to vector<8x8x8xf32>
    %58 = arith.subf %54, %57 : vector<8x8x8xf32>
    %59 = math.exp %58 : vector<8x8x8xf32>
    %cst_10 = arith.constant dense<0.000000e+00> : vector<8x8xf32>
    %60 = vector.multi_reduction <add>, %59, %cst_10 [2] : vector<8x8x8xf32> to vector<8x8xf32>
    %61 = vector.shape_cast %60 : vector<8x8xf32> to vector<8x8x1xf32>
    %62 = tpu.reciprocal %61 {approx = true} : vector<8x8x1xf32> -> vector<8x8x1xf32>
    %63 = vector.broadcast %62 : vector<8x8x1xf32> to vector<8x8x8xf32>
    %64 = arith.mulf %59, %63 : vector<8x8x8xf32>
    %65 = arith.truncf %64 : vector<8x8x8xf32> to vector<8x8x8xbf16>
    "tpu.trace_start"() <{level = 10 : i32, message = "bqk,bkd->bqd"}> : () -> ()
    %cst_11 = arith.constant dense<0.000000e+00> : vector<8x8x8xf32>
    %66 = tpu.matmul %65, %50, %cst_11 {dimension_numbers = #tpu.dot_dimension_numbers<[2], [1], [1], [2], [0, 0, 0, 1, 1, 2], [0], [0]>} : vector<8x8x8xbf16>, vector<8x8x8xbf16>, vector<8x8x8xf32> -> vector<8x8x8xf32>
    "tpu.trace_stop"() : () -> ()
    %67 = vector.shape_cast %66 : vector<8x8x8xf32> to vector<4x2x8x8xf32>
    %68 = vector.shape_cast %67 : vector<4x2x8x8xf32> to vector<4x16x8xf32>
    %69 = vector.extract_strided_slice %68 {offsets = [0, 0, 0], sizes = [1, 16, 8], strides = [1, 1, 1]} : vector<4x16x8xf32> to vector<1x16x8xf32>
    %70 = vector.shape_cast %69 : vector<1x16x8xf32> to vector<16x8xf32>
    %71 = vector.extract_strided_slice %68 {offsets = [1, 0, 0], sizes = [1, 16, 8], strides = [1, 1, 1]} : vector<4x16x8xf32> to vector<1x16x8xf32>
    %72 = vector.shape_cast %71 : vector<1x16x8xf32> to vector<16x8xf32>
    %73 = vector.extract_strided_slice %68 {offsets = [2, 0, 0], sizes = [1, 16, 8], strides = [1, 1, 1]} : vector<4x16x8xf32> to vector<1x16x8xf32>
    %74 = vector.shape_cast %73 : vector<1x16x8xf32> to vector<16x8xf32>
    %75 = vector.extract_strided_slice %68 {offsets = [3, 0, 0], sizes = [1, 16, 8], strides = [1, 1, 1]} : vector<4x16x8xf32> to vector<1x16x8xf32>
    %76 = vector.shape_cast %75 : vector<1x16x8xf32> to vector<16x8xf32>
    %77 = tpu.concatenate %70, %72, %74, %76 in 1 : vector<16x8xf32>, vector<16x8xf32>, vector<16x8xf32>, vector<16x8xf32> -> vector<16x32xf32>
    %78 = arith.truncf %77 : vector<16x32xf32> to vector<16x32xbf16>
    %c0_12 = arith.constant 0 : index
    %c0_13 = arith.constant 0 : index
    %79 = vector.load %arg3[%c0_12, %c0_13] : memref<32x32xbf16, #tpu.memory_space<vmem>>, vector<32x32xbf16>
    %cst_14 = arith.constant dense<0.000000e+00> : vector<16x32xf32>
    %80 = tpu.matmul %78, %79, %cst_14 {dimension_numbers = #tpu.dot_dimension_numbers<[1], [0], [0], [1], [0, 0, 1, 1], [], []>} : vector<16x32xbf16>, vector<32x32xbf16>, vector<16x32xf32> -> vector<16x32xf32>
    %81 = vector.broadcast %3 : vector<1x32xf32> to vector<16x32xf32>
    %82 = arith.addf %80, %81 : vector<16x32xf32>
    %83 = arith.addf %82, %0 : vector<16x32xf32>
    %cst_15 = arith.constant dense<0.000000e+00> : vector<16xf32>
    %84 = vector.multi_reduction <add>, %83, %cst_15 [1] : vector<16x32xf32> to vector<16xf32>
    %85 = vector.shape_cast %84 : vector<16xf32> to vector<16x1xf32>
    %cst_16 = arith.constant 3.200000e+01 : f32
    %86 = vector.broadcast %cst_16 : f32 to vector<16x1xf32>
    %87 = arith.divf %85, %86 : vector<16x1xf32>
    %88 = vector.broadcast %87 : vector<16x1xf32> to vector<16x32xf32>
    %89 = arith.subf %83, %88 : vector<16x32xf32>
    %90 = arith.mulf %89, %89 : vector<16x32xf32>
    %cst_17 = arith.constant dense<0.000000e+00> : vector<16xf32>
    %91 = vector.multi_reduction <add>, %90, %cst_17 [1] : vector<16x32xf32> to vector<16xf32>
    %92 = vector.shape_cast %91 : vector<16xf32> to vector<16x1xf32>
    %cst_18 = arith.constant 3.200000e+01 : f32
    %93 = vector.broadcast %cst_18 : f32 to vector<16x1xf32>
    %94 = arith.divf %92, %93 : vector<16x1xf32>
    %cst_19 = arith.constant 9.99999996E-13 : f32
    %95 = vector.broadcast %cst_19 : f32 to vector<16x1xf32>
    %96 = arith.addf %94, %95 : vector<16x1xf32>
    %97 = math.rsqrt %96 : vector<16x1xf32>
    %98 = vector.broadcast %97 : vector<16x1xf32> to vector<16x32xf32>
    %99 = arith.mulf %89, %98 : vector<16x32xf32>
    %100 = vector.broadcast %4 : vector<1x32xf32> to vector<16x32xf32>
    %101 = arith.mulf %100, %99 : vector<16x32xf32>
    %102 = vector.broadcast %5 : vector<1x32xf32> to vector<16x32xf32>
    %103 = arith.addf %101, %102 : vector<16x32xf32>
    %104 = arith.truncf %103 : vector<16x32xf32> to vector<16x32xbf16>
    %c0_20 = arith.constant 0 : index
    %c0_21 = arith.constant 0 : index
    %105 = vector.load %arg4[%c0_20, %c0_21] : memref<32x64xbf16, #tpu.memory_space<vmem>>, vector<32x64xbf16>
    %cst_22 = arith.constant dense<0.000000e+00> : vector<16x64xf32>
    %106 = tpu.matmul %104, %105, %cst_22 {dimension_numbers = #tpu.dot_dimension_numbers<[1], [0], [0], [1], [0, 0, 1, 1], [], []>} : vector<16x32xbf16>, vector<32x64xbf16>, vector<16x64xf32> -> vector<16x64xf32>
    %107 = vector.broadcast %6 : vector<1x64xf32> to vector<16x64xf32>
    %108 = arith.addf %106, %107 : vector<16x64xf32>
    %cst_23 = arith.constant 5.000000e-01 : f32
    %109 = vector.broadcast %cst_23 : f32 to vector<16x64xf32>
    %110 = arith.mulf %109, %108 : vector<16x64xf32>
    %cst_24 = arith.constant 4.471500e-02 : f32
    %111 = vector.broadcast %cst_24 : f32 to vector<16x64xf32>
    %112 = arith.mulf %111, %108 : vector<16x64xf32>
    %113 = arith.mulf %112, %108 : vector<16x64xf32>
    %114 = arith.mulf %113, %108 : vector<16x64xf32>
    %115 = arith.addf %108, %114 : vector<16x64xf32>
    %cst_25 = arith.constant 0.797884583 : f32
    %116 = vector.broadcast %cst_25 : f32 to vector<16x64xf32>
    %117 = arith.mulf %116, %115 : vector<16x64xf32>
    %118 = math.tanh %117 : vector<16x64xf32>
    %cst_26 = arith.constant 1.000000e+00 : f32
    %119 = vector.broadcast %cst_26 : f32 to vector<16x64xf32>
    %120 = arith.addf %119, %118 : vector<16x64xf32>
    %121 = arith.mulf %110, %120 : vector<16x64xf32>
    %122 = arith.truncf %121 : vector<16x64xf32> to vector<16x64xbf16>
    %c0_27 = arith.constant 0 : index
    %c0_28 = arith.constant 0 : index
    %123 = vector.load %arg5[%c0_27, %c0_28] : memref<64x32xbf16, #tpu.memory_space<vmem>>, vector<64x32xbf16>
    %cst_29 = arith.constant dense<0.000000e+00> : vector<16x32xf32>
    %124 = tpu.matmul %122, %123, %cst_29 {dimension_numbers = #tpu.dot_dimension_numbers<[1], [0], [0], [1], [0, 0, 1, 1], [], []>} : vector<16x64xbf16>, vector<64x32xbf16>, vector<16x32xf32> -> vector<16x32xf32>
    %125 = vector.broadcast %7 : vector<1x32xf32> to vector<16x32xf32>
    %126 = arith.addf %124, %125 : vector<16x32xf32>
    %127 = arith.addf %126, %103 : vector<16x32xf32>
    %cst_30 = arith.constant dense<0.000000e+00> : vector<16xf32>
    %128 = vector.multi_reduction <add>, %127, %cst_30 [1] : vector<16x32xf32> to vector<16xf32>
    %129 = vector.shape_cast %128 : vector<16xf32> to vector<16x1xf32>
    %cst_31 = arith.constant 3.200000e+01 : f32
    %130 = vector.broadcast %cst_31 : f32 to vector<16x1xf32>
    %131 = arith.divf %129, %130 : vector<16x1xf32>
    %132 = vector.broadcast %131 : vector<16x1xf32> to vector<16x32xf32>
    %133 = arith.subf %127, %132 : vector<16x32xf32>
    %134 = arith.mulf %133, %133 : vector<16x32xf32>
    %cst_32 = arith.constant dense<0.000000e+00> : vector<16xf32>
    %135 = vector.multi_reduction <add>, %134, %cst_32 [1] : vector<16x32xf32> to vector<16xf32>
    %136 = vector.shape_cast %135 : vector<16xf32> to vector<16x1xf32>
    %cst_33 = arith.constant 3.200000e+01 : f32
    %137 = vector.broadcast %cst_33 : f32 to vector<16x1xf32>
    %138 = arith.divf %136, %137 : vector<16x1xf32>
    %cst_34 = arith.constant 9.99999996E-13 : f32
    %139 = vector.broadcast %cst_34 : f32 to vector<16x1xf32>
    %140 = arith.addf %138, %139 : vector<16x1xf32>
    %141 = math.rsqrt %140 : vector<16x1xf32>
    %142 = vector.broadcast %141 : vector<16x1xf32> to vector<16x32xf32>
    %143 = arith.mulf %133, %142 : vector<16x32xf32>
    %144 = vector.broadcast %8 : vector<1x32xf32> to vector<16x32xf32>
    %145 = arith.mulf %144, %143 : vector<16x32xf32>
    %146 = vector.broadcast %9 : vector<1x32xf32> to vector<16x32xf32>
    %147 = arith.addf %145, %146 : vector<16x32xf32>
    %c0_35 = arith.constant 0 : index
    %c0_36 = arith.constant 0 : index
    %148 = vector.load %arg7[%c0_35, %c0_36] : memref<16x32xf32, #tpu.memory_space<vmem>>, vector<16x32xf32>
    tpu.vector_store %arg7[%c0_35, %c0_36], %147 {strides = array<i32>} : memref<16x32xf32, #tpu.memory_space<vmem>>, vector<16x32xf32>,
    return
  }
}

</mosaic_0001>

<bundles_post_ra>
// kernel: _bert_layer_impl.1
= control target key start
LH: loop header
LB: loop body
LE: loop exit
PB: predicated region body
PF: predicated region fallthrough
CT: control target
= control target key end

     0   :  { %v1752_v1 = vmov 0.0   ;;  %vm1753_vm0 = vmmov 0   ;;  %vm52_vm1 = vcmask 261120   ;;  %s2128_s0 = inlined_call_operand.vmem [shape: f32[16,32], index: 0, kind: input, shape index: {}]   ;;  %s2129_s1 = inlined_call_operand.vmem [shape: f32[8,1,8], index: 1, kind: input, shape index: {}]   ;;  %s2130_s2 = inlined_call_operand.vmem [shape: bf16[32,96], index: 2, kind: input, shape index: {}]   ;;  %s2131_s3 = inlined_call_operand.vmem [shape: bf16[32,32], index: 3, kind: input, shape index: {}]   ;;  %s2132_s4 = inlined_call_operand.vmem [shape: bf16[32,64], index: 4, kind: input, shape index: {}]   ;;  %s2133_s5 = inlined_call_operand.vmem [shape: bf16[64,32], index: 5, kind: input, shape index: {}]   ;;  %s2134_s6 = inlined_call_operand.vmem [shape: f32[8,96], index: 6, kind: input, shape index: {}]   ;;  %s2135_s7 = inlined_call_operand.hbm [shape: f32[16,32], index: 7, kind: output, shape index: {}]  }
   0x1   :  { %v1674_v0 = vld [vmem:[%s2130_s2] sm:$0xff]   ;;  %1500 = vmatprep.subr.bf16.mxu0 %v1752_v1  ;;  %1508 = vmatprep.subr.bf16.mxu1 %v1752_v1  ;;  %v1675_v2 = vld [vmem:[%s2130_s2 + $0x8] sm:$0xff]  }
   0x2   :  { %1501 = vmatpush3.bf16.msra.mxu0 %v1674_v0  ;;  %1504 = vmatprep.mubr.msk.bf16.mxu0 %vm1753_vm0, %v1752_v1  ;;  %v1817_v3 = vld [vmem:[%s2128_s0] sm:$0xff]  ;;  %v1822_v4 = vld [vmem:[%s2128_s0 + $0x8] sm:$0xff] }
   0x3   :  { %1502 = vmatprep.subr.bf16.mxu0 %v1752_v1  ;;  %1510 = vmatprep.mubr.msk.bf16.mxu1 %vm1753_vm0, %v1752_v1  ;;  %v31_v5 = vpack.c.bf16 %v1822_v4, %v1817_v3 }
   0x6   :  { %1503 = vmatpush3.bf16.msra.mxu0 %v1675_v2 }
   0x7   :  { %1514 = vmatprep.subr.bf16.mxu0 %v1752_v1 }
   0x8   :  { %12 = vsyncpa [#allocation3], 0  ;;  %v36_v6 = vlaneseq  ;;  %v1839_v9 = vld [vmem:[%s2134_s6] sm:$0xff]  ;;  %s1754_s9 = smov 104   ;;  %s1755_s10 = smov 120   ;;  %vm184_vm2 = vcmask 64512  }
   0x9   :  { %1505 = vmatmul.mubr.msk.bf16.vlgmr.msra.gmra.mrb[0].mxu0 %vm52_vm1, %v31_v5  ;;  %s1756_s11 = smov 96   ;;  %s1757_s12 = smov 112   ;;  %vm675_vm3 = vcmask 1043456   ;;  %v1419_v55 = vld [vmem:[%s2129_s1] ss:$0 sm:$0xff]  ;;  %vm1081_vm4 = vcmask 130048  }
   0xa   :  { %1516 = vmatprep.mubr.msk.bf16.mxu0 %vm1753_vm0, %v1752_v1  ;;  %v1833_v7 = vshrl.u32 %v36_v6, 7  ;;  %s1758_s6 = smov 64   ;;  %v1420_v60 = vld [vmem:[%s2129_s1 + $0x1] ss:$0 sm:$0xff]  ;;  %s1760_s2 = smov 16   ;;  %vm1084_vm5 = vcmask 195584  }
   0xb   :  { %vm1313_vm6 = vcmask 523264  }
   0xc   :  { %v38_v8 = vsub.s32 0, %v1833_v7 }
   0xe   :  { %v39_v10 = vrot.slane %v1839_v9, %v38_v8 }
  0xdc   :  { %v90_v11 = vpop.f32.mrb[0].mxu0 }
  0xdd   :  { %v1506_v12 = vpop.f32.mrb[1].mxu0  ;;  %v91_v14 = vadd.f32 %v90_v11, %v39_v10  ;;  %v1422_v11 = vld [vmem:[%s2129_s1 + $0x3] ss:$0 sm:$0xff] }
  0xde   :  { %v93_v13 = vpop.f32.mrb[2].mxu0 }
  0xdf   :  { %v94_v15 = vadd.f32 %v93_v13, %v39_v10  ;;  %v1507_v16 = vpop.f32.mrb[3].mxu0  ;;  %v117_v18 = vpack.c.bf16 %v91_v14, %v91_v14  ;;  %v1421_v10 = vld [vmem:[%s2129_s1 + $0x2] ss:$0 sm:$0xff] }
  0xe1   :  { %v1654_v17 = vpack.i.bf16 %v94_v15, %v91_v14  ;;  %v118_v19 = vpack.c.bf16 %v94_v15, %v94_v15 }
  0xe3   :  { %1655 = vrot.lane.b32.xlu1 %v1654_v17, %s1754_s9  ;;  %1645 = vrot.lane.b32.xlu0 %v1654_v17, %s1755_s10  ;;  %s1761_s9 = smov 24  }
  0xe7   :  { %182 = vrot.lane.b32.xlu1 %v117_v18, %s1756_s11  ;;  %1650 = vrot.lane.b32.xlu0 %v1654_v17, %s1757_s12 }
  0xeb   :  { %232 = vrot.lane.b32.xlu0 %v118_v19, %s1756_s11 }
 0x155   :  { %v1656_v20 = vpop.permute.xlu1 %1655  ;;  %v1646_v21 = vpop.permute.xlu0 %1645 }
 0x156   :  { %v1648_v22 = vunpack.i.h.bf16 %v1646_v21  ;;  %v1647_v23 = vunpack.i.l.bf16 %v1646_v21  ;;  %v1657_v31 = vunpack.i.l.bf16 %v1656_v20  ;;  %v1658_v34 = vunpack.i.h.bf16 %v1656_v20 }
 0x158   :  { %v1844_v24 = vpack.c.bf16 %v1648_v22, %v1648_v22  ;;  %v1846_v25 = vpack.c.bf16 %v1647_v23, %v1647_v23  ;;  %v1863_v37 = vpack.c.bf16 %v1657_v31, %v1657_v31  ;;  %v1866_v38 = vpack.c.bf16 %v1658_v34, %v1658_v34 }
 0x159   :  { %v183_v26 = vpop.permute.xlu1 %182  ;;  %v1651_v27 = vpop.permute.xlu0 %1650 }
 0x15a   :  { %v1653_v28 = vunpack.i.h.bf16 %v1651_v27  ;;  %v1652_v29 = vunpack.i.l.bf16 %v1651_v27  ;;  %281 = vrot.lane.b32.xlu1 %v1846_v25, %s1756_s11  ;;  %330 = vrot.lane.b32.xlu0 %v1844_v24, %s1756_s11  ;;  %v189_v30 = vsel %vm184_vm2, %v183_v26, 0  ;;  %v1423_v26 = vld [vmem:[%s2129_s1 + $0x4] ss:$0 sm:$0xff]  ;;  %v1424_v27 = vld [vmem:[%s2129_s1 + $0x5] ss:$0 sm:$0xff] }
 0x15b   :  { %1509 = vmatpush3.bf16.xpose.msra.mxu1 %v189_v30 }
 0x15c   :  { %v1853_v32 = vpack.c.bf16 %v1653_v28, %v1653_v28  ;;  %v1855_v33 = vpack.c.bf16 %v1652_v29, %v1652_v29  ;;  %1520 = vmatprep.subr.bf16.mxu1 %v1752_v1 }
 0x15d   :  { %v233_v35 = vpop.permute.xlu0 %232 }
 0x15e   :  { %v238_v36 = vsel %vm184_vm2, %v233_v35, 0  ;;  %379 = vrot.lane.b32.xlu1 %v1855_v33, %s1756_s11  ;;  %428 = vrot.lane.b32.xlu0 %v1853_v32, %s1756_s11 }
 0x15f   :  { %1515 = vmatpush3.bf16.xpose.msra.mxu0 %v238_v36 }
 0x160   :  { %1526 = vmatprep.subr.bf16.mxu0 %v1752_v1 }
 0x162   :  { %1511 = vmatmul.mubr.msk.bf16.vlgmr.msra.gmra.mrb[0].mxu1 %vm184_vm2, %v117_v18  ;;  %477 = vrot.lane.b32.xlu1 %v1863_v37, %s1756_s11 }
 0x163   :  { %526 = vrot.lane.b32.xlu0 %v1866_v38, %s1756_s11  ;;  %1522 = vmatprep.mubr.msk.bf16.mxu1 %vm1753_vm0, %v1752_v1 }
 0x166   :  { %719 = vrot.lane.b32.xlu1 %v118_v19, %s1758_s6  ;;  %1517 = vmatmul.mubr.msk.bf16.vlgmr.msra.gmra.mrb[4].mxu0 %vm184_vm2, %v118_v19 }
 0x167   :  { %670 = vrot.lane.b32.xlu0 %v117_v18, %s1758_s6  ;;  %1528 = vmatprep.mubr.msk.bf16.mxu0 %vm1753_vm0, %v1752_v1 }
 0x1cc   :  { %v282_v39 = vpop.permute.xlu1 %281  ;;  %v331_v40 = vpop.permute.xlu0 %330 }
 0x1cd   :  { %v287_v41 = vsel %vm184_vm2, %v282_v39, 0  ;;  %v336_v42 = vsel %vm184_vm2, %v331_v40, 0 }
 0x1ce   :  { %1521 = vmatpush3.bf16.xpose.msra.mxu1 %v287_v41  ;;  %1527 = vmatpush3.bf16.xpose.msra.mxu0 %v336_v42 }
 0x1cf   :  { %1532 = vmatprep.subr.bf16.mxu1 %v1752_v1  ;;  %1538 = vmatprep.subr.bf16.mxu0 %v1752_v1 }
 0x1d0   :  { %v380_v43 = vpop.permute.xlu1 %379  ;;  %v429_v44 = vpop.permute.xlu0 %428 }
 0x1d1   :  { %v385_v45 = vsel %vm184_vm2, %v380_v43, 0  ;;  %v434_v46 = vsel %vm184_vm2, %v429_v44, 0  ;;  %v1425_v44 = vld [vmem:[%s2129_s1 + $0x6] ss:$0 sm:$0xff] }
 0x1d4   :  { %v478_v47 = vpop.permute.xlu1 %477 }
 0x1d5   :  { %1523 = vmatmul.mubr.msk.bf16.vlgmr.msra.gmra.mrb[4].mxu1 %vm184_vm2, %v1846_v25  ;;  %1529 = vmatmul.mubr.msk.bf16.vlgmr.msra.gmra.mrb[8].mxu0 %vm184_vm2, %v1844_v24  ;;  %v527_v48 = vpop.permute.xlu0 %526  ;;  %v483_v49 = vsel %vm184_vm2, %v478_v47, 0 }
 0x1d6   :  { %1533 = vmatpush3.bf16.xpose.msra.mxu1 %v385_v45  ;;  %1539 = vmatpush3.bf16.xpose.msra.mxu0 %v434_v46  ;;  %v532_v50 = vsel %vm184_vm2, %v527_v48, 0  ;;  %v1426_v45 = vld [vmem:[%s2129_s1 + $0x7] ss:$0 sm:$0xff]  ;;  %s1759_s1 = smov 8  }
 0x1d7   :  { %1534 = vmatprep.mubr.msk.bf16.mxu1 %vm1753_vm0, %v1752_v1  ;;  %1540 = vmatprep.mubr.msk.bf16.mxu0 %vm1753_vm0, %v1752_v1 }
 0x1d8   :  { %1544 = vmatprep.subr.bf16.mxu1 %v1752_v1  ;;  %1550 = vmatprep.subr.bf16.mxu0 %v1752_v1  ;;  %v720_v51 = vpop.permute.xlu1 %719 }
 0x1d9   :  { %v671_v52 = vpop.permute.xlu0 %670  ;;  %v725_v53 = vsel %vm675_vm3, %v720_v51, 0 }
 0x1da   :  { %v677_v54 = vsel %vm675_vm3, %v671_v52, 0 }
 0x1dd   :  { %1535 = vmatmul.mubr.msk.bf16.vlgmr.msra.gmra.mrb[8].mxu1 %vm184_vm2, %v1855_v33  ;;  %1541 = vmatmul.mubr.msk.bf16.vlgmr.msra.gmra.mrb[12].mxu0 %vm184_vm2, %v1853_v32 }
 0x1de   :  { %1545 = vmatpush3.bf16.xpose.msra.mxu1 %v483_v49  ;;  %1551 = vmatpush3.bf16.xpose.msra.mxu0 %v532_v50 }
 0x1df   :  { %1546 = vmatprep.mubr.msk.bf16.mxu1 %vm1753_vm0, %v1752_v1  ;;  %1552 = vmatprep.mubr.msk.bf16.mxu0 %vm1753_vm0, %v1752_v1 }
 0x1e0   :  { %1556 = vmatprep.subr.bf16.mxu1 %v1752_v1  ;;  %1562 = vmatprep.subr.bf16.mxu0 %v1752_v1 }
 0x1e5   :  { %1547 = vmatmul.mubr.msk.bf16.vlgmr.msra.gmra.mrb[12].mxu1 %vm184_vm2, %v1863_v37  ;;  %1553 = vmatmul.mubr.msk.bf16.vlgmr.msra.gmra.mrb[16].mxu0 %vm184_vm2, %v1866_v38 }
 0x1e6   :  { %1557 = vmatpush3.bf16.msra.mxu1 %v677_v54  ;;  %1563 = vmatpush3.bf16.msra.mxu0 %v725_v53 }
 0x1e7   :  { %1558 = vmatprep.mubr.msk.bf16.mxu1 %vm1753_vm0, %v1752_v1  ;;  %1564 = vmatprep.mubr.msk.bf16.mxu0 %vm1753_vm0, %v1752_v1 }
 0x1e8   :  { %1568 = vmatprep.subr.bf16.mxu1 %v1752_v1  ;;  %1574 = vmatprep.subr.bf16.mxu0 %v1752_v1 }
 0x235   :  { %v225_v56 = vpop.f32.mrb[0].mxu1 }
 0x236   :  { %v1923_v57 = vadd.f32 %v1419_v55, %v225_v56  ;;  %v1512_v58 = vpop.f32.mrb[1].mxu1 }
 0x237   :  { %v228_v59 = vpop.f32.mrb[2].mxu1 }
 0x238   :  { %v1513_v61 = vpop.f32.mrb[3].mxu1  ;;  %v574_v62 = vsel %vm184_vm2, %v1923_v57, -inf }
 0x239   :  { %575 = vmax.xlane.f32.xlu1 %v574_v62  ;;  %v274_v63 = vpop.f32.mrb[4].mxu0 }
 0x23a   :  { %v275_v0 = vadd.f32 %v1420_v60, %v274_v63  ;;  %v1518_v2 = vpop.f32.mrb[5].mxu0 }
 0x23b   :  { %v277_v5 = vpop.f32.mrb[6].mxu0 }
 0x23c   :  { %v1519_v6 = vpop.f32.mrb[7].mxu0  ;;  %v577_v8 = vsel %vm184_vm2, %v275_v0, -inf }
 0x23d   :  { %578 = vmax.xlane.f32.xlu0 %v577_v8 }
 0x2a8   :  { %v323_v12 = vpop.f32.mrb[4].mxu1  ;;  %v372_v13 = vpop.f32.mrb[8].mxu0 }
 0x2a9   :  { %v1937_v14 = vadd.f32 %v1421_v10, %v323_v12  ;;  %v1939_v15 = vadd.f32 %v1422_v11, %v372_v13  ;;  %v1524_v16 = vpop.f32.mrb[5].mxu1  ;;  %v1530_v17 = vpop.f32.mrb[9].mxu0 }
 0x2aa   :  { %v326_v18 = vpop.f32.mrb[6].mxu1  ;;  %v375_v19 = vpop.f32.mrb[10].mxu0 }
 0x2ab   :  { %v1525_v20 = vpop.f32.mrb[7].mxu1  ;;  %v1531_v21 = vpop.f32.mrb[11].mxu0  ;;  %v580_v22 = vsel %vm184_vm2, %v1937_v14, -inf  ;;  %v583_v23 = vsel %vm184_vm2, %v1939_v15, -inf }
 0x2ac   :  { %581 = vmax.xlane.f32.xlu0 %v580_v22  ;;  %584 = vmax.xlane.f32.xlu1 %v583_v23 }
 0x2b0   :  { %v421_v28 = vpop.f32.mrb[8].mxu1  ;;  %v470_v29 = vpop.f32.mrb[12].mxu0 }
 0x2b1   :  { %v1951_v30 = vadd.f32 %v1423_v26, %v421_v28  ;;  %v471_v31 = vadd.f32 %v1424_v27, %v470_v29  ;;  %v1536_v34 = vpop.f32.mrb[9].mxu1  ;;  %v1542_v35 = vpop.f32.mrb[13].mxu0 }
 0x2b2   :  { %v424_v36 = vpop.f32.mrb[10].mxu1  ;;  %v473_v39 = vpop.f32.mrb[14].mxu0 }
 0x2b3   :  { %v1537_v40 = vpop.f32.mrb[11].mxu1  ;;  %v1543_v41 = vpop.f32.mrb[15].mxu0  ;;  %v586_v42 = vsel %vm184_vm2, %v1951_v30, -inf  ;;  %v589_v43 = vsel %vm184_vm2, %v471_v31, -inf }
 0x2b4   :  { %587 = vmax.xlane.f32.xlu0 %v586_v42  ;;  %590 = vmax.xlane.f32.xlu1 %v589_v43 }
 0x2b8   :  { %v519_v46 = vpop.f32.mrb[12].mxu1  ;;  %v568_v47 = vpop.f32.mrb[16].mxu0 }
 0x2b9   :  { %v1962_v48 = vadd.f32 %v1425_v44, %v519_v46  ;;  %v569_v49 = vadd.f32 %v1426_v45, %v568_v47  ;;  %v1548_v50 = vpop.f32.mrb[13].mxu1  ;;  %v1554_v51 = vpop.f32.mrb[17].mxu0 }
 0x2ba   :  { %v522_v52 = vpop.f32.mrb[14].mxu1  ;;  %v571_v53 = vpop.f32.mrb[18].mxu0 }
 0x2bb   :  { %v1549_v54 = vpop.f32.mrb[15].mxu1  ;;  %v1555_v55 = vpop.f32.mrb[19].mxu0  ;;  %v592_v56 = vsel %vm184_vm2, %v1962_v48, -inf  ;;  %v595_v58 = vsel %vm184_vm2, %v569_v49, -inf }
 0x2bc   :  { %593 = vmax.xlane.f32.xlu0 %v592_v56  ;;  %596 = vmax.xlane.f32.xlu1 %v595_v58 }
 0x2c6   :  { %v576_v59 = vpop.xlane.xlu1 %575 }
 0x2c7   :  { %v598_v61 = vsub.f32 %v1923_v57, %v576_v59 }
 0x2c9   :  { %v606_v63 = vmul.f32 1.442695, %v598_v61 }
 0x2ca   :  { %v579_v60 = vpop.xlane.xlu0 %578 }
 0x2cb   :  { %v599_v62 = vsub.f32 %v275_v0, %v579_v60  ;;  %1684 = vpow2.f32 %v606_v63 }
 0x2cd   :  { %767 = vrot.lane.b32.xlu1 %v1846_v25, %s1758_s6  ;;  %v608_v2 = vmul.f32 1.442695, %v599_v62 }
 0x2cf   :  { %1686 = vpow2.f32 %v608_v2 }
 0x2d2   :  { %815 = vrot.lane.b32.xlu0 %v1844_v24, %s1758_s6 }
 0x2d5   :  { %v1685_v5 = vpop.eup %1684 }
 0x2d6   :  { %v622_v8 = vsel %vm184_vm2, %v1685_v5, 0.0 }
 0x2d9   :  { %v1687_v6 = vpop.eup %1686 }
 0x2da   :  { %v625_v10 = vsel %vm184_vm2, %v1687_v6, 0.0 }
 0x2f1   :  { %623 = vadd.xlane.f32.xlu0 %v622_v8  ;;  %626 = vadd.xlane.f32.xlu1 %v625_v10 }
 0x302   :  { %863 = vrot.lane.b32.xlu1 %v1855_v33, %s1758_s6 }
 0x339   :  { %v582_v24 = vpop.xlane.xlu0 %581  ;;  %v585_v25 = vpop.xlane.xlu1 %584 }
 0x33a   :  { %v600_v57 = vsub.f32 %v1937_v14, %v582_v24  ;;  %v601_v0 = vsub.f32 %v1939_v15, %v585_v25 }
 0x33c   :  { %v610_v11 = vmul.f32 1.442695, %v600_v57  ;;  %v612_v12 = vmul.f32 1.442695, %v601_v0 }
 0x33e   :  { %1688 = vpow2.f32 %v610_v11 }
 0x33f   :  { %1690 = vpow2.f32 %v612_v12 }
 0x341   :  { %v591_v13 = vpop.xlane.xlu1 %590  ;;  %v588_v28 = vpop.xlane.xlu0 %587 }
 0x342   :  { %v603_v16 = vsub.f32 %v471_v31, %v591_v13  ;;  %v602_v29 = vsub.f32 %v1951_v30, %v588_v28 }
 0x344   :  { %v616_v17 = vmul.f32 1.442695, %v603_v16  ;;  %v614_v34 = vmul.f32 1.442695, %v602_v29 }
 0x346   :  { %1692 = vpow2.f32 %v616_v17 }
 0x348   :  { %v1978_v18 = vpop.eup %1688 }
 0x349   :  { %v1980_v19 = vpop.eup %1690  ;;  %v597_v20 = vpop.xlane.xlu1 %596  ;;  %v628_v33 = vsel %vm184_vm2, %v1978_v18, 0.0 }
 0x34a   :  { %v605_v21 = vsub.f32 %v569_v49, %v597_v20  ;;  %629 = vadd.xlane.f32.xlu0 %v628_v33  ;;  %v631_v14 = vsel %vm184_vm2, %v1980_v19, 0.0  ;;  %v594_v31 = vpop.xlane.xlu0 %593 }
 0x34b   :  { %632 = vadd.xlane.f32.xlu1 %v631_v14  ;;  %v604_v35 = vsub.f32 %v1962_v48, %v594_v31 }
 0x34c   :  { %v620_v15 = vmul.f32 1.442695, %v605_v21 }
 0x34d   :  { %v618_v36 = vmul.f32 1.442695, %v604_v35  ;;  %v768_v40 = vpop.permute.xlu1 %767 }
 0x34e   :  { %1694 = vpow2.f32 %v620_v15  ;;  %v816_v39 = vpop.permute.xlu0 %815  ;;  %v773_v50 = vsel %vm675_vm3, %v768_v40, 0 }
 0x34f   :  { %1696 = vpow2.f32 %v614_v34  ;;  %v821_v51 = vsel %vm675_vm3, %v816_v39, 0 }
 0x350   :  { %v1986_v22 = vpop.eup %1692  ;;  %1698 = vpow2.f32 %v618_v36 }
 0x351   :  { %v637_v23 = vsel %vm184_vm2, %v1986_v22, 0.0 }
 0x352   :  { %638 = vadd.xlane.f32.xlu1 %v637_v23 }
 0x358   :  { %v1990_v26 = vpop.eup %1694 }
 0x359   :  { %v643_v27 = vsel %vm184_vm2, %v1990_v26, 0.0  ;;  %v2000_v41 = vpop.eup %1696 }
 0x35a   :  { %644 = vadd.xlane.f32.xlu1 %v643_v27  ;;  %v2004_v30 = vpop.eup %1698 }
 0x360   :  { %911 = vrot.lane.b32.xlu0 %v1853_v32, %s1758_s6  ;;  %v634_v32 = vsel %vm184_vm2, %v2000_v41, 0.0 }
 0x36b   :  { %959 = vrot.lane.b32.xlu1 %v1863_v37, %s1758_s6  ;;  %v640_v37 = vsel %vm184_vm2, %v2004_v30, 0.0 }
 0x37e   :  { %v624_v42 = vpop.xlane.xlu0 %623  ;;  %v627_v43 = vpop.xlane.xlu1 %626 }
 0x37f   :  { %1700 = vrcp.f32 %v624_v42  ;;  %635 = vadd.xlane.f32.xlu0 %v634_v32 }
 0x380   :  { %1702 = vrcp.f32 %v627_v43 }
 0x382   :  { %v864_v52 = vpop.permute.xlu1 %863 }
 0x383   :  { %641 = vadd.xlane.f32.xlu0 %v640_v37  ;;  %v869_v2 = vsel %vm675_vm3, %v864_v52, 0  ;;  %v1677_v52 = vld [vmem:[%s2131_s3 + $0x8] sm:$0xff]  }
 0x389   :  { %v1701_v44 = vpop.eup %1700 }
 0x38a   :  { %v1703_v45 = vpop.eup %1702  ;;  %v654_v46 = vmul.f32 %v1701_v44, %v1685_v5 }
 0x38b   :  { %v655_v47 = vmul.f32 %v1703_v45, %v1687_v6 }
 0x38c   :  { %v662_v48 = vpack.c.bf16 %v654_v46, %v654_v46  ;;  %v1676_v46 = vld [vmem:[%s2131_s3] sm:$0xff]  }
 0x38d   :  { %v663_v49 = vpack.c.bf16 %v655_v47, %v655_v47 }
 0x38e   :  { %1559 = vmatmul.mubr.msk.bf16.vlgmr.msra.gmra.mrb[16].mxu1 %vm184_vm2, %v662_v48 }
 0x38f   :  { %1565 = vmatmul.mubr.msk.bf16.vlgmr.msra.gmra.mrb[20].mxu0 %vm184_vm2, %v663_v49  ;;  %1569 = vmatpush3.bf16.msra.mxu1 %v773_v50 }
 0x390   :  { %1575 = vmatpush3.bf16.msra.mxu0 %v821_v51  ;;  %1570 = vmatprep.mubr.msk.bf16.mxu1 %vm1753_vm0, %v1752_v1 }
 0x391   :  { %1576 = vmatprep.mubr.msk.bf16.mxu0 %vm1753_vm0, %v1752_v1  ;;  %1580 = vmatprep.subr.bf16.mxu1 %v1752_v1 }
 0x392   :  { %1586 = vmatprep.subr.bf16.mxu0 %v1752_v1 }
 0x399   :  { %1007 = vrot.lane.b32.xlu0 %v1866_v38, %s1758_s6 }
 0x3d7   :  { %v630_v53 = vpop.xlane.xlu0 %629 }
 0x3d8   :  { %1704 = vrcp.f32 %v630_v53  ;;  %v633_v54 = vpop.xlane.xlu1 %632 }
 0x3d9   :  { %1706 = vrcp.f32 %v633_v54 }
 0x3db   :  { %v912_v61 = vpop.permute.xlu0 %911 }
 0x3dc   :  { %v917_v38 = vsel %vm675_vm3, %v912_v61, 0 }
 0x3df   :  { %v639_v55 = vpop.xlane.xlu1 %638 }
 0x3e0   :  { %1708 = vrcp.f32 %v639_v55 }
 0x3e2   :  { %v1705_v56 = vpop.eup %1704 }
 0x3e3   :  { %v1707_v58 = vpop.eup %1706  ;;  %v656_v59 = vmul.f32 %v1705_v56, %v1978_v18 }
 0x3e4   :  { %v657_v60 = vmul.f32 %v1707_v58, %v1980_v19 }
 0x3e5   :  { %v664_v62 = vpack.c.bf16 %v656_v59, %v656_v59 }
 0x3e6   :  { %v665_v63 = vpack.c.bf16 %v657_v60, %v657_v60 }
 0x3e7   :  { %1571 = vmatmul.mubr.msk.bf16.vlgmr.msra.gmra.mrb[20].mxu1 %vm184_vm2, %v664_v62  ;;  %v645_v10 = vpop.xlane.xlu1 %644 }
 0x3e8   :  { %1577 = vmatmul.mubr.msk.bf16.vlgmr.msra.gmra.mrb[24].mxu0 %vm184_vm2, %v665_v63  ;;  %1581 = vmatpush3.bf16.msra.mxu1 %v869_v2  ;;  %1710 = vrcp.f32 %v645_v10 }
 0x3e9   :  { %1587 = vmatpush3.bf16.msra.mxu0 %v917_v38  ;;  %1588 = vmatprep.mubr.msk.bf16.mxu0 %vm1753_vm0, %v1752_v1 }
 0x3ea   :  { %1598 = vmatprep.subr.bf16.mxu0 %v1752_v1  ;;  %1582 = vmatprep.mubr.msk.bf16.mxu1 %vm1753_vm0, %v1752_v1  ;;  %v1709_v5 = vpop.eup %1708 }
 0x3eb   :  { %1592 = vmatprep.subr.bf16.mxu1 %v1752_v1  ;;  %v659_v6 = vmul.f32 %v1709_v5, %v1986_v22  ;;  %v960_v18 = vpop.permute.xlu1 %959 }
 0x3ec   :  { %v965_v33 = vsel %vm675_vm3, %v960_v18, 0  ;;  %v1094_v18 = vsub.s32 1, %v1833_v7 }
 0x3ed   :  { %v667_v8 = vpack.c.bf16 %v659_v6, %v659_v6 }
 0x3f0   :  { %1589 = vmatmul.mubr.msk.bf16.vlgmr.msra.gmra.mrb[28].mxu0 %vm184_vm2, %v667_v8 }
 0x3f1   :  { %1600 = vmatprep.mubr.msk.bf16.mxu0 %vm1753_vm0, %v1752_v1 }
 0x3f2   :  { %v1711_v25 = vpop.eup %1710 }
 0x3f3   :  { %v661_v0 = vmul.f32 %v1711_v25, %v1990_v26 }
 0x3f5   :  { %v669_v16 = vpack.c.bf16 %v661_v0, %v661_v0 }
 0x40c   :  { %v636_v24 = vpop.xlane.xlu0 %635 }
 0x40d   :  { %1712 = vrcp.f32 %v636_v24 }
 0x410   :  { %v642_v57 = vpop.xlane.xlu0 %641 }
 0x411   :  { %1714 = vrcp.f32 %v642_v57 }
 0x414   :  { %v1008_v11 = vpop.permute.xlu0 %1007 }
 0x415   :  { %v1013_v12 = vsel %vm675_vm3, %v1008_v11, 0 }
 0x416   :  { %1599 = vmatpush3.bf16.msra.mxu0 %v1013_v12 }
 0x417   :  { %v1713_v13 = vpop.eup %1712  ;;  %1612 = vmatprep.subr.bf16.mxu0 %v1752_v1 }
 0x418   :  { %v658_v17 = vmul.f32 %v1713_v13, %v2000_v41 }
 0x419   :  { %1601 = vmatmul.mubr.msk.bf16.vlgmr.msra.gmra.mrb[32].mxu0 %vm184_vm2, %v669_v16 }
 0x41a   :  { %v666_v19 = vpack.c.bf16 %v658_v17, %v658_v17  ;;  %1616 = vmatprep.mubr.msk.bf16.mxu0 %vm1753_vm0, %v1752_v1 }
 0x41b   :  { %v1715_v20 = vpop.eup %1714 }
 0x41c   :  { %1583 = vmatmul.mubr.msk.bf16.vlgmr.msra.gmra.mrb[24].mxu1 %vm184_vm2, %v666_v19  ;;  %v660_v21 = vmul.f32 %v1715_v20, %v2004_v30  ;;  %v1095_v19 = vrot.slane %v1839_v9, %v1094_v18 }
 0x41d   :  { %1593 = vmatpush3.bf16.msra.mxu1 %v965_v33  ;;  %1594 = vmatprep.mubr.msk.bf16.mxu1 %vm1753_vm0, %v1752_v1 }
 0x41e   :  { %1604 = vmatprep.subr.bf16.mxu1 %v1752_v1  ;;  %v668_v14 = vpack.c.bf16 %v660_v21, %v660_v21 }
 0x424   :  { %1595 = vmatmul.mubr.msk.bf16.vlgmr.msra.gmra.mrb[28].mxu1 %vm184_vm2, %v668_v14 }
 0x425   :  { %1608 = vmatprep.mubr.msk.bf16.mxu1 %vm1753_vm0, %v1752_v1  ;;  %1605 = vmatpush3.bf16.msra.mxu1 %v1676_v46 }
 0x426   :  { %1606 = vmatprep.subr.bf16.mxu1 %v1752_v1 }
 0x429   :  { %1607 = vmatpush3.bf16.msra.mxu1 %v1677_v52 }
 0x42a   :  { %1620 = vmatprep.subr.bf16.mxu1 %v1752_v1 }
 0x461   :  { %v713_v15 = vpop.f32.mrb[16].mxu1 }
 0x462   :  { %v761_v22 = vpop.f32.mrb[20].mxu0  ;;  %v1560_v23 = vpop.f32.mrb[17].mxu1 }
 0x463   :  { %v1566_v26 = vpop.f32.mrb[21].mxu0  ;;  %v716_v27 = vpop.f32.mrb[18].mxu1 }
 0x464   :  { %v764_v28 = vpop.f32.mrb[22].mxu0  ;;  %v1561_v29 = vpop.f32.mrb[19].mxu1 }
 0x465   :  { %v1567_v31 = vpop.f32.mrb[23].mxu0 }
 0x4ba   :  { %v809_v34 = vpop.f32.mrb[20].mxu1 }
 0x4bb   :  { %v857_v35 = vpop.f32.mrb[24].mxu0  ;;  %v1572_v36 = vpop.f32.mrb[21].mxu1 }
 0x4bc   :  { %v1659_v39 = vpack.i.bf16 %v857_v35, %v809_v34  ;;  %v1578_v40 = vpop.f32.mrb[25].mxu0  ;;  %v812_v41 = vpop.f32.mrb[22].mxu1 }
 0x4bd   :  { %v860_v42 = vpop.f32.mrb[26].mxu0  ;;  %v1573_v43 = vpop.f32.mrb[23].mxu1 }
 0x4be   :  { %1660 = vrot.lane.b32.xlu1 %v1659_v39, %s1759_s1  ;;  %v1579_v32 = vpop.f32.mrb[27].mxu0  ;;  %v1679_v43 = vld [vmem:[%s2132_s4 + $0x8] sm:$0xff]  }
 0x4c3   :  { %v953_v30 = vpop.f32.mrb[28].mxu0 }
 0x4c4   :  { %v1590_v37 = vpop.f32.mrb[29].mxu0 }
 0x4c5   :  { %v956_v44 = vpop.f32.mrb[30].mxu0 }
 0x4c6   :  { %v1591_v45 = vpop.f32.mrb[31].mxu0 }
 0x4ec   :  { %v1049_v47 = vpop.f32.mrb[32].mxu0 }
 0x4ed   :  { %v1602_v48 = vpop.f32.mrb[33].mxu0 }
 0x4ee   :  { %v1052_v49 = vpop.f32.mrb[34].mxu0 }
 0x4ef   :  { %v905_v50 = vpop.f32.mrb[24].mxu1  ;;  %v1603_v51 = vpop.f32.mrb[35].mxu0 }
 0x4f0   :  { %v1664_v53 = vpack.i.bf16 %v953_v30, %v905_v50  ;;  %v1584_v54 = vpop.f32.mrb[25].mxu1  ;;  %v1189_v51 = vsub.s32 3, %v1833_v7 }
 0x4f1   :  { %v908_v55 = vpop.f32.mrb[26].mxu1 }
 0x4f2   :  { %v1585_v56 = vpop.f32.mrb[27].mxu1  ;;  %1665 = vrot.lane.b32.xlu0 %v1664_v53, %s1760_s2  ;;  %v1190_v55 = vrot.slane %v1839_v9, %v1189_v51 }
 0x4f7   :  { %v1001_v58 = vpop.f32.mrb[28].mxu1 }
 0x4f8   :  { %v1669_v59 = vpack.i.bf16 %v1049_v47, %v1001_v58  ;;  %v1596_v60 = vpop.f32.mrb[29].mxu1  ;;  %v1183_v47 = vsub.s32 2, %v1833_v7 }
 0x4f9   :  { %v1004_v61 = vpop.f32.mrb[30].mxu1 }
 0x4fa   :  { %v1597_v62 = vpop.f32.mrb[31].mxu1  ;;  %1670 = vrot.lane.b32.xlu1 %v1669_v59, %s1761_s9  ;;  %v1184_v49 = vrot.slane %v1839_v9, %v1183_v47  ;;  %v1680_v61 = vld [vmem:[%s2133_s5] sm:$0xff]  }
 0x4fb   :  { %v1681_v62 = vld [vmem:[%s2133_s5 + $0x8] sm:$0xff]  }
 0x530   :  { %v1661_v63 = vpop.permute.xlu1 %1660 }
 0x531   :  { %v1663_v38 = vunpack.i.h.bf16 %v1661_v63  ;;  %v1662_v5 = vunpack.i.l.bf16 %v1661_v63  ;;  %v1682_v63 = vld [vmem:[%s2133_s5 + $0x10] sm:$0xff]  }
 0x533   :  { %v1080_v24 = vsel %vm184_vm2, %v761_v22, %v1663_v38  ;;  %v1079_v25 = vsel %vm184_vm2, %v713_v15, %v1662_v5  ;;  %v1200_v38 = vsub.s32 4, %v1833_v7 }
 0x535   :  { %v1201_v5 = vrot.slane %v1839_v9, %v1200_v38 }
 0x564   :  { %v1666_v2 = vpop.permute.xlu0 %1665 }
 0x565   :  { %v1668_v6 = vunpack.i.h.bf16 %v1666_v2  ;;  %v1667_v8 = vunpack.i.l.bf16 %v1666_v2  ;;  %v1683_v2 = vld [vmem:[%s2133_s5 + $0x18] sm:$0xff]   ;;  %s1762_s5 = smov [#allocation2]  }
 0x566   :  { %s1405_s19 = sshll.u32 %s1762_s5, 4  ;;  %s1406_s19 = int_to_ptr.vmem [resolvable:$true] %s1405_s19 }
 0x567   :  { %v1083_v11 = vsel %vm1081_vm4, %v1080_v24, %v1668_v6  ;;  %v1082_v12 = vsel %vm1081_vm4, %v1079_v25, %v1667_v8  ;;  %s1728_s20 = scalar_lea.vmem %s1406_s19, 256  ;;  %p1733_p1 = scmp.lt.s32.totalorder %s1406_s19, %s1406_s19 }
 0x568   :  { %p1729_p0 = scmp.ne.s32.totalorder %s1406_s19, %s1728_s20  ;;  %p1734_p2 = scmp.lt.s32.totalorder %s1728_s20, %s1728_s20 }
 0x56a   :  { %p1735_p3 = por %p1734_p2, %p1733_p1 }
 0x56c   :  { %v1671_v10 = vpop.permute.xlu1 %1670  ;;  %p1736_p4 = pnand %p1735_p3, %p1729_p0 }
 0x56d   :  { %v1673_v57 = vunpack.i.h.bf16 %v1671_v10  ;;  %v1672_v0 = vunpack.i.l.bf16 %v1671_v10 }
 0x56f   :  { %v1086_v13 = vsel %vm1084_vm5, %v1083_v11, %v1673_v57  ;;  %v1085_v16 = vsel %vm1084_vm5, %v1082_v12, %v1672_v0 }
 0x570   :  { %v1087_v17 = vpack.c.bf16 %v1086_v13, %v1085_v16 }
 0x572   :  { %1609 = vmatmul.mubr.msk.bf16.vlgmr.msra.gmra.mrb[32].mxu1 %vm52_vm1, %v1087_v17 }
 0x573   :  { %1628 = vmatprep.mubr.msk.bf16.mxu1 %vm1753_vm0, %v1752_v1  ;;  %1621 = vmatpush3.bf16.msra.mxu1 %v1680_v61 }
 0x574   :  { %1622 = vmatprep.subr.bf16.mxu1 %v1752_v1 }
 0x577   :  { %1623 = vmatpush3.bf16.msra.mxu1 %v1681_v62 }
 0x578   :  { %1624 = vmatprep.subr.bf16.mxu1 %v1752_v1 }
 0x57b   :  { %1625 = vmatpush3.bf16.msra.mxu1 %v1682_v63 }
 0x57c   :  { %1626 = vmatprep.subr.bf16.mxu1 %v1752_v1 }
 0x57f   :  { %1627 = vmatpush3.bf16.msra.mxu1 %v1683_v2 }
 0x645   :  { %v1145_v20 = vpop.f32.mrb[32].mxu1 }
 0x646   :  { %v1146_v33 = vadd.f32 %v1145_v20, %v1095_v19  ;;  %v1610_v21 = vpop.f32.mrb[33].mxu1 }
 0x647   :  { %v1148_v14 = vpop.f32.mrb[34].mxu1 }
 0x648   :  { %v1149_v15 = vadd.f32 %v1148_v14, %v1095_v19  ;;  %v1611_v22 = vpop.f32.mrb[35].mxu1  ;;  %v1152_v23 = vadd.f32 %v1146_v33, %v1817_v3 }
 0x64a   :  { %v1154_v26 = vsel %vm52_vm1, %v1152_v23, 0.0  ;;  %v1153_v27 = vadd.f32 %v1149_v15, %v1822_v4  ;;  %v1678_v4 = vld [vmem:[%s2132_s4] sm:$0xff]  }
 0x64b   :  { %1155 = vadd.xlane.f32.xlu0 %v1154_v26  ;;  %1613 = vmatpush3.bf16.msra.mxu0 %v1678_v4 }
 0x64c   :  { %v1157_v28 = vsel %vm52_vm1, %v1153_v27, 0.0  ;;  %1614 = vmatprep.subr.bf16.mxu0 %v1752_v1 }
 0x64d   :  { %1158 = vadd.xlane.f32.xlu1 %v1157_v28 }
 0x64f   :  { %1615 = vmatpush3.bf16.msra.mxu0 %v1679_v43 }
 0x6d8   :  { %v1156_v29 = vpop.xlane.xlu0 %1155 }
 0x6d9   :  { %v1161_v31 = vmul.f32 0.03125, %v1156_v29  ;;  %v1287_v29 = vsub.s32 5, %v1833_v7 }
 0x6da   :  { %v1159_v34 = vpop.xlane.xlu1 %1158 }
 0x6db   :  { %v1163_v35 = vsub.f32 %v1152_v23, %v1161_v31  ;;  %v1162_v36 = vmul.f32 0.03125, %v1159_v34  ;;  %v1288_v31 = vrot.slane %v1839_v9, %v1287_v29 }
 0x6dd   :  { %v1164_v39 = vsub.f32 %v1153_v27, %v1162_v36  ;;  %v1165_v40 = vmul.f32 %v1163_v35, %v1163_v35 }
 0x6df   :  { %v1167_v41 = vsel %vm52_vm1, %v1165_v40, 0.0  ;;  %v1166_v42 = vmul.f32 %v1164_v39, %v1164_v39 }
 0x6e0   :  { %1168 = vadd.xlane.f32.xlu0 %v1167_v41 }
 0x6e1   :  { %v1170_v3 = vsel %vm52_vm1, %v1166_v42, 0.0 }
 0x6e4   :  { %1171 = vadd.xlane.f32.xlu0 %v1170_v3 }
 0x76d   :  { %v1169_v32 = vpop.xlane.xlu0 %1168 }
 0x76e   :  { %v1173_v30 = vmul.f32 0.03125, %v1169_v32 }
 0x770   :  { %v1175_v37 = vadd.f32 1e-12, %v1173_v30 }
 0x771   :  { %v1172_v44 = vpop.xlane.xlu0 %1171 }
 0x772   :  { %1716 = vrsqrt.f32 %v1175_v37  ;;  %v1174_v45 = vmul.f32 0.03125, %v1172_v44 }
 0x774   :  { %v1176_v46 = vadd.f32 1e-12, %v1174_v45 }
 0x776   :  { %1718 = vrsqrt.f32 %v1176_v46 }
 0x77c   :  { %v1717_v48 = vpop.eup %1716 }
 0x77d   :  { %v1179_v50 = vmul.f32 %v1717_v48, %v1163_v35 }
 0x77f   :  { %v1185_v53 = vmul.f32 %v1184_v49, %v1179_v50 }
 0x780   :  { %v1719_v52 = vpop.eup %1718 }
 0x781   :  { %v1180_v54 = vmul.f32 %v1719_v52, %v1164_v39  ;;  %v1191_v58 = vadd.f32 %v1190_v55, %v1185_v53 }
 0x783   :  { %v1186_v56 = vmul.f32 %v1184_v49, %v1180_v54 }
 0x785   :  { %v1192_v59 = vadd.f32 %v1190_v55, %v1186_v56 }
 0x787   :  { %v1193_v60 = vpack.c.bf16 %v1192_v59, %v1191_v58 }
 0x789   :  { %1617 = vmatmul.mubr.msk.bf16.vlgmr.msra.gmra.mrb[36].mxu0 %vm52_vm1, %v1193_v60 }
 0x85c   :  { %v1251_v6 = vpop.f32.mrb[36].mxu0 }
 0x85d   :  { %v1252_v8 = vadd.f32 %v1251_v6, %v1201_v5  ;;  %v1618_v10 = vpop.f32.mrb[37].mxu0 }
 0x85e   :  { %v1254_v24 = vpop.f32.mrb[38].mxu0 }
 0x85f   :  { %v1260_v25 = vmul.f32 0.044715, %v1252_v8  ;;  %v1255_v57 = vadd.f32 %v1254_v24, %v1201_v5  ;;  %v1619_v0 = vpop.f32.mrb[39].mxu0  ;;  %v1258_v15 = vmul.f32 0.5, %v1252_v8 }
 0x861   :  { %v1262_v11 = vmul.f32 %v1260_v25, %v1252_v8  ;;  %v1261_v12 = vmul.f32 0.044715, %v1255_v57  ;;  %v1259_v22 = vmul.f32 0.5, %v1255_v57 }
 0x863   :  { %v1264_v13 = vmul.f32 %v1262_v11, %v1252_v8  ;;  %v1263_v16 = vmul.f32 %v1261_v12, %v1255_v57 }
 0x865   :  { %v1266_v17 = vadd.f32 %v1264_v13, %v1252_v8  ;;  %v1265_v18 = vmul.f32 %v1263_v16, %v1255_v57 }
 0x867   :  { %v1268_v19 = vmul.f32 0.7978846, %v1266_v17  ;;  %v1267_v1 = vadd.f32 %v1265_v18, %v1255_v57 }
 0x869   :  { %1720 = vtanh.f32 %v1268_v19  ;;  %v1269_v20 = vmul.f32 0.7978846, %v1267_v1 }
 0x86b   :  { %1722 = vtanh.f32 %v1269_v20 }
 0x873   :  { %v1721_v33 = vpop.eup %1720 }
 0x874   :  { %v1272_v21 = vadd.f32 1.0, %v1721_v33 }
 0x875   :  { %v1723_v14 = vpop.eup %1722 }
 0x876   :  { %v1273_v23 = vadd.f32 1.0, %v1723_v14  ;;  %v1274_v26 = vmul.f32 %v1272_v21, %v1258_v15 }
 0x878   :  { %v1275_v27 = vmul.f32 %v1273_v23, %v1259_v22 }
 0x87a   :  { %v1276_v28 = vpack.c.bf16 %v1275_v27, %v1274_v26 }
 0x87c   :  { %1629 = vmatmul.mubr.msk.bf16.vlgmr.msra.gmra.mrb[36].mxu1 %vm1313_vm6, %v1276_v28 }
 0x94f   :  { %v1351_v34 = vpop.f32.mrb[36].mxu1 }
 0x950   :  { %v1352_v35 = vadd.f32 %v1351_v34, %v1288_v31  ;;  %v1630_v36 = vpop.f32.mrb[37].mxu1 }
 0x951   :  { %v1354_v39 = vpop.f32.mrb[38].mxu1 }
 0x952   :  { %v1355_v40 = vadd.f32 %v1354_v39, %v1288_v31  ;;  %v1631_v41 = vpop.f32.mrb[39].mxu1  ;;  %v1358_v42 = vadd.f32 %v1352_v35, %v1191_v58  ;;  %v1388_v58 = vsub.s32 6, %v1833_v7 }
 0x954   :  { %v1360_v3 = vsel %vm52_vm1, %v1358_v42, 0.0  ;;  %v1359_v4 = vadd.f32 %v1355_v40, %v1192_v59  ;;  %v1394_v59 = vsub.s32 7, %v1833_v7  ;;  %v1389_v60 = vrot.slane %v1839_v9, %v1388_v58 }
 0x955   :  { %1361 = vadd.xlane.f32.xlu1 %v1360_v3 }
 0x956   :  { %v1363_v43 = vsel %vm52_vm1, %v1359_v4, 0.0  ;;  %v1395_v63 = vrot.slane %v1839_v9, %v1394_v59 }
 0x957   :  { %1364 = vadd.xlane.f32.xlu0 %v1363_v43 }
 0x9e2   :  { %v1362_v32 = vpop.xlane.xlu1 %1361 }
 0x9e3   :  { %v1366_v30 = vmul.f32 0.03125, %v1362_v32 }
 0x9e4   :  { %v1365_v37 = vpop.xlane.xlu0 %1364 }
 0x9e5   :  { %v1368_v44 = vsub.f32 %v1358_v42, %v1366_v30  ;;  %v1367_v45 = vmul.f32 0.03125, %v1365_v37 }
 0x9e7   :  { %v1369_v46 = vsub.f32 %v1359_v4, %v1367_v45  ;;  %v1370_v47 = vmul.f32 %v1368_v44, %v1368_v44 }
 0x9e9   :  { %v1372_v48 = vsel %vm52_vm1, %v1370_v47, 0.0  ;;  %v1371_v49 = vmul.f32 %v1369_v46, %v1369_v46 }
 0x9ea   :  { %1373 = vadd.xlane.f32.xlu1 %v1372_v48 }
 0x9eb   :  { %v1375_v50 = vsel %vm52_vm1, %v1371_v49, 0.0 }
 0x9ec   :  { %1376 = vadd.xlane.f32.xlu0 %v1375_v50 }
 0xa77   :  { %v1374_v51 = vpop.xlane.xlu1 %1373 }
 0xa78   :  { %v1378_v52 = vmul.f32 0.03125, %v1374_v51 }
 0xa79   :  { %v1377_v53 = vpop.xlane.xlu0 %1376 }
 0xa7a   :  { %v1380_v54 = vadd.f32 1e-12, %v1378_v52  ;;  %v1379_v55 = vmul.f32 0.03125, %v1377_v53 }
 0xa7c   :  { %1724 = vrsqrt.f32 %v1380_v54  ;;  %v1381_v56 = vadd.f32 1e-12, %v1379_v55 }
 0xa7e   :  { %1726 = vrsqrt.f32 %v1381_v56 }
 0xa86   :  { %v1725_v61 = vpop.eup %1724 }
 0xa87   :  { %v1384_v62 = vmul.f32 %v1725_v61, %v1368_v44 }
 0xa88   :  { %v1727_v2 = vpop.eup %1726 }
 0xa89   :  { %v1385_v38 = vmul.f32 %v1727_v2, %v1369_v46  ;;  %v1390_v5 = vmul.f32 %v1389_v60, %v1384_v62 }
 0xa8b   :  { %v1391_v6 = vmul.f32 %v1389_v60, %v1385_v38  ;;  %v1396_v8 = vadd.f32 %v1395_v63, %v1390_v5 }
 0xa8d   :  { %v1397_v10 = vadd.f32 %v1395_v63, %v1391_v6  ;;  %1398 = vst.msk [vmem:[#allocation2] sm:$0xff] %vm52_vm1, %v1396_v8 }
 0xa8f   :  { %1399 = vst.msk [vmem:[#allocation2 + $0x8] sm:$0xff] %vm52_vm1, %v1397_v10 }
 0xa90   :  { %1739 = shalt.err (!%p1736_p4)
}
 0xa91   :  { %s1740_s23 = scalar_lea.hbm %s2135_s7, 256 }
 0xa92   :  { %p1741_p5 = scmp.ne.s32.totalorder %s2135_s7, %s1740_s23  ;;  %p1744_p6 = scmp.lt.u32.totalorder %s1740_s23, %s2135_s7 }
 0xa94   :  { %p1746_p7 = pnand %p1744_p6, %p1741_p5 }
 0xa96   :  { %1749 = shalt.err (!%p1746_p7)
}
 0xa97   :  { %s1763_s28 = smov 128  }
 0xa98   :  { %1411 = dma.vmem_to_hbm [thread:$0]  %s1406_s19, 256, %s2135_s7, [#allocation3], %s1763_s28, %s1763_s28, %s1759_s1  }
 0xa99   :  { %1750 = dma.done.wait [#allocation3], 256  }
 0xa9a   :  { %1751 = vsyncadd [#allocation3], 4294967040 }
 0xa9b   :  { %1415 = vsyncpa [#allocation3], 1 }

</bundles_post_ra>
